<compile_context>
chip_gen: v6e
topology: v6e:2x2x1
jax: 0.10.0
libtpu: 0.0.40
codegen_flags: <defaults>
</compile_context>

<pallas_src>
import functools

import jax
import jax.numpy as jnp
from jax.experimental import pallas as pl
from jax.experimental.pallas import tpu as pltpu

_LANE_CANDIDATES = (1024, 512, 256, 128)   # lane widths: multiples of 128 -> unmasked vst


def _device_kind() -> str:
    try:
        return jax.devices()[0].device_kind.lower()
    except Exception:  # pragma: no cover - defensive (e.g. no device yet)
        return ""


def _select_tuning():
    """Per-generation (block_bytes_per_buffer, vmem_limit_bytes)."""
    kind = _device_kind()
    if "v7" in kind:
        # v7x: ~3.2 TB/s HBM -> larger blocks amortize the ~0.35us/step pipeline
        # overhead.  2 arrays (in+out) x 2 buffers x 6 MiB = 24 MiB live, well
        # under 64 MiB physical VMEM; limit set to 48 MiB for headroom.
        return 6 * 1024 * 1024, 48 * 1024 * 1024
    # v5e / v6e: 2 MiB/buffer already reaches ~85% of the measured elementwise
    # HBM roofline; 8 MiB live fits v5e's 16 MiB scoped default (limit raised to
    # 32 MiB only as safety margin, never used in full).
    return 2 * 1024 * 1024, 32 * 1024 * 1024


def _has_low_precision_vpu() -> bool:
    """v6e / v7x have bf16 VALU + EUP; v5e and older do not."""
    kind = _device_kind()
    return ("v6" in kind) or ("v7" in kind)


def _leaky_silu_kernel(slope_ref, x_ref, o_ref, *, compute_dtype):
    # y = (1 - a) * silu(x) + a * x  ==  x * ((1 - a) * sigmoid(x) + a)
    a = slope_ref[0].astype(compute_dtype)          # SMEM scalar, no recompile per value
    one = jnp.asarray(1.0, dtype=compute_dtype)
    x = x_ref[...].astype(compute_dtype)
    o_ref[...] = (x * ((one - a) * jax.nn.sigmoid(x) + a)).astype(o_ref.dtype)


def leaky_silu(x, negative_slope=0.01):
    """Elementwise LeakySiLU via Pallas. Preserves shape & dtype of x."""
    orig_shape = x.shape
    orig_dtype = x.dtype
    n = x.size
    if n == 0:
        return x

    itemsize = jnp.dtype(orig_dtype).itemsize
    # Packed sublane tile height: 8 for 32-bit, 16 for 16-bit, 32 for 8-bit.
    sub = {4: 8, 2: 16, 1: 32}.get(itemsize, 8)

    block_bytes, vmem_limit = _select_tuning()

    # Widest lane count that divides n -> zero-copy reshape, no pad, no slice.
    lanes = next((L for L in _LANE_CANDIDATES if n % L == 0), None)
    needs_pad = lanes is None
    if needs_pad:
        # Rare path (n not a multiple of 128): pad only the tail of the flat
        # view.  Zero-padding is numerically safe (LeakySiLU(0) == 0) and the
        # padded elements are dropped after the kernel.
        lanes = _LANE_CANDIDATES[0]

    rows = pl.cdiv(n, lanes)
    padded_n = rows * lanes

    # Block rows: aim for ~block_bytes per buffer, aligned to the packed
    # sublane tile; a single full-extent block for small inputs.
    desired = max(sub, (block_bytes // (lanes * itemsize)) // sub * sub)
    if rows <= desired:
        block_rows = rows          # block == full array dims: always legal
    else:
        block_rows = desired       # multiple of `sub`; last grid block may be
                                   # partial -> Pallas masks the ragged edge.
    grid = pl.cdiv(rows, block_rows)

    flat = x.reshape(-1)                      # zero-copy
    if needs_pad:
        flat = jnp.pad(flat, (0, padded_n - n))
    x2d = flat.reshape(rows, lanes)           # zero-copy when not padded

    slope = jnp.asarray(negative_slope, dtype=jnp.float32).reshape((1,))

    # bf16 math on chips with bf16 VALU/EUP keeps the kernel cleanly HBM-bound
    # at v7x bandwidth; everything else computes in f32.
    compute_dtype = (
        jnp.bfloat16
        if (orig_dtype == jnp.bfloat16 and _has_low_precision_vpu())
        else jnp.float32
    )

    kernel = functools.partial(_leaky_silu_kernel, compute_dtype=compute_dtype)

    out2d = pl.pallas_call(
        kernel,
        out_shape=jax.ShapeDtypeStruct((rows, lanes), orig_dtype),
        grid=(grid,),
        in_specs=[
            # negative_slope: one f32 scalar, resident in SMEM for all steps.
            pl.BlockSpec(memory_space=pltpu.MemorySpace.SMEM),
            pl.BlockSpec((block_rows, lanes), lambda i: (i, 0)),
        ],
        out_specs=pl.BlockSpec((block_rows, lanes), lambda i: (i, 0)),
        compiler_params=pltpu.CompilerParams(
            # Independent blocks -> shardable across v7x's 2 TensorCores
            # (no-op on single-TC v5e/v6e).
            # TODO(synk): if an xprof trace on v7x shows a single TC running all
            # steps, switch this axis to pltpu.CORE_PARALLEL.
            dimension_semantics=("parallel",),
            vmem_limit_bytes=vmem_limit,
        ),
    )(slope, x2d)

    out = out2d.reshape(-1)
    if needs_pad:
        out = out[:n]
    return out.reshape(orig_shape)


def leaky_silu_ref(x, negative_slope=0.01):
    a = jnp.asarray(negative_slope, dtype=jnp.float32)
    xf = x.astype(jnp.float32)
    y = (1.0 - a) * xf * jax.nn.sigmoid(xf) + a * xf
    return y.astype(x.dtype)


if __name__ == "__main__":
    key = jax.random.PRNGKey(0)

    # Primary check: small NCHW input consistent with the conv-style module.
    # n = 2048 -> zero-copy (rows=2, lanes=1024) path, no pad, no slice.
    x = jax.random.normal(key, (2, 4, 16, 16), dtype=jnp.float32)
    out = jax.block_until_ready(leaky_silu(x, negative_slope=0.01))
    ref = leaky_silu_ref(x, negative_slope=0.01)
    assert out.shape == x.shape and out.dtype == x.dtype
    assert jnp.allclose(out, ref, atol=1e-5, rtol=1e-5)

    # Secondary check: odd element count (105, not a multiple of 128) exercises
    # the rare tail-pad fallback path.
    x_odd = jax.random.normal(jax.random.PRNGKey(1), (3, 5, 7), dtype=jnp.float32)
    out_odd = jax.block_until_ready(leaky_silu(x_odd, negative_slope=0.2))
    ref_odd = leaky_silu_ref(x_odd, negative_slope=0.2)
    assert out_odd.shape == x_odd.shape and out_odd.dtype == x_odd.dtype
    assert jnp.allclose(out_odd, ref_odd, atol=1e-5, rtol=1e-5)

    print("KERNEL_OK")
</pallas_src>

<mosaic_0001>
module attributes {stable_mosaic.version = 11 : i64} {
  func.func @_leaky_silu_kernel(%arg0: i32, %arg1: memref<1xf32, #tpu.memory_space<smem>>, %arg2: memref<2x1024xf32, #tpu.memory_space<vmem>>, %arg3: memref<2x1024xf32, #tpu.memory_space<vmem>>) attributes {dimension_semantics = [#tpu.dimension_semantics<parallel>], iteration_bounds = array<i64: 1>, scalar_prefetch = 0 : i64, scratch_operands = 0 : i64, tpu.core_type = #tpu.core_type<tc>, window_params = [{transform_indices = @transform_0, window_bounds = array<i64: 1>}, {transform_indices = @transform_1, window_bounds = array<i64: 2, 1024>}, {transform_indices = @transform_2, window_bounds = array<i64: 2, 1024>}]} {
    %c0 = arith.constant 0 : index
    %0 = memref.load %arg1[%c0] : memref<1xf32, #tpu.memory_space<smem>>
    %c0_0 = arith.constant 0 : index
    %c0_1 = arith.constant 0 : index
    %1 = vector.load %arg2[%c0_0, %c0_1] : memref<2x1024xf32, #tpu.memory_space<vmem>>, vector<2x1024xf32>
    %cst = arith.constant 1.000000e+00 : f32
    %2 = arith.subf %cst, %0 : f32
    %3 = arith.negf %1 : vector<2x1024xf32>
    %4 = math.exp %3 : vector<2x1024xf32>
    %cst_2 = arith.constant 1.000000e+00 : f32
    %5 = vector.broadcast %cst_2 : f32 to vector<2x1024xf32>
    %6 = arith.addf %5, %4 : vector<2x1024xf32>
    %7 = arith.divf %5, %6 : vector<2x1024xf32>
    %8 = vector.broadcast %2 : f32 to vector<2x1024xf32>
    %9 = arith.mulf %8, %7 : vector<2x1024xf32>
    %10 = vector.broadcast %0 : f32 to vector<2x1024xf32>
    %11 = arith.addf %9, %10 : vector<2x1024xf32>
    %12 = arith.mulf %1, %11 : vector<2x1024xf32>
    %c0_3 = arith.constant 0 : index
    %c0_4 = arith.constant 0 : index
    %13 = vector.load %arg3[%c0_3, %c0_4] : memref<2x1024xf32, #tpu.memory_space<vmem>>, vector<2x1024xf32>
    tpu.vector_store %arg3[%c0_3, %c0_4], %12 {strides = array<i32>} : memref<2x1024xf32, #tpu.memory_space<vmem>>, vector<2x1024xf32>,
    return
  }
  func.func @transform_0(%arg0: i32) -> i32 {
    %c0_i32 = arith.constant 0 : i32
    %c0_i32_0 = arith.constant 0 : i32
    return %c0_i32 : i32
  }
  func.func @transform_1(%arg0: i32) -> (i32, i32) {
    %c0_i32 = arith.constant 0 : i32
    %c0_i32_0 = arith.constant 0 : i32
    return %arg0, %c0_i32 : i32, i32
  }
  func.func @transform_2(%arg0: i32) -> (i32, i32) {
    %c0_i32 = arith.constant 0 : i32
    %c0_i32_0 = arith.constant 0 : i32
    return %arg0, %c0_i32 : i32, i32
  }
}

</mosaic_0001>

<bundles_post_ra>
// kernel: tpu_custom_call.1
= control target key start
LH: loop header
LB: loop body
LE: loop exit
PB: predicated region body
PF: predicated region fallthrough
CT: control target
= control target key end

     0   :  { %8 = vsyncpa [#allocation4], 0  ;;  %s151_s0 = inlined_call_operand.<no memory space> [shape: f32[1], index: 0, kind: input, shape index: {}]   ;;  %s152_s1 = inlined_call_operand.hbm [shape: f32[2,1024], index: 1, kind: input, shape index: {}]   ;;  %s153_s2 = inlined_call_operand.hbm [shape: f32[2,1024], index: 2, kind: output, shape index: {}]  }
   0x1   :  { %9 = vsyncpa [#allocation5], 0  ;;  %s122_s9 = smov [#allocation3]  }
   0x2   :  { %s18_s10 = sshll.u32 %s122_s9, 4  ;;  %s19_s10 = int_to_ptr.vmem [resolvable:$true] %s18_s10 }
   0x3   :  { %s86_s11 = scalar_lea.vmem %s19_s10, 256  ;;  %p91_p1 = scmp.lt.s32.totalorder %s19_s10, %s19_s10 }
   0x4   :  { %p87_p0 = scmp.ne.s32.totalorder %s19_s10, %s86_s11  ;;  %p92_p2 = scmp.lt.s32.totalorder %s86_s11, %s86_s11 }
   0x6   :  { %p93_p3 = por %p92_p2, %p91_p1 }
   0x8   :  { %p94_p4 = pnand %p93_p3, %p87_p0 }
   0xa   :  { %97 = shalt.err (!%p94_p4)
}
   0xb   :  { %21 = dma.hbm_to_vmem [thread:$0]  %s152_s1, 256, %s19_s10, [#allocation4]  }
   0xc   :  { %118 = dma.done.wait [#allocation4], 256  }
   0xd   :  { %119 = vsyncadd [#allocation4], 4294967040  ;;  %v26_v0 = vld [vmem:[#allocation3] sm:$0xff]  ;;  %v27_v1 = vld [vmem:[#allocation3 + $0x8] sm:$0xff]  ;;  %s28_s16 = ssub.f32 1.0, %s151_s0  ;;  %v44_v10 = vstv %s151_s0  ;;  %s123_s18 = smov [#allocation6]  }
   0xe   :  { %v66_v2 = vmul.f32 -1.442695, %v26_v0  ;;  %v67_v3 = vmul.f32 -1.442695, %v27_v1  ;;  %s57_s19 = sshll.u32 %s123_s18, 4  ;;  %s58_s19 = int_to_ptr.vmem [resolvable:$true] %s57_s19 }
   0xf   :  { %v41_v8 = vstv %s28_s16  ;;  %s98_s20 = scalar_lea.vmem %s58_s19, 256  ;;  %p103_p6 = scmp.lt.s32.totalorder %s58_s19, %s58_s19 }
  0x10   :  { %70 = vpow2.f32 %v66_v2  ;;  %p99_p5 = scmp.ne.s32.totalorder %s58_s19, %s98_s20  ;;  %p104_p7 = scmp.lt.s32.totalorder %s98_s20, %s98_s20 }
  0x11   :  { %72 = vpow2.f32 %v67_v3 }
  0x12   :  { %p105_p8 = por %p104_p7, %p103_p6 }
  0x14   :  { %p106_p9 = pnand %p105_p8, %p99_p5 }
  0x1d   :  { %v71_v4 = vpop.eup %70 }
  0x1e   :  { %v73_v5 = vpop.eup %72  ;;  %v35_v6 = vadd.f32 1.0, %v71_v4 }
  0x1f   :  { %v36_v7 = vadd.f32 1.0, %v73_v5 }
  0x20   :  { %74 = vrcp.f32 %v35_v6 }
  0x21   :  { %76 = vrcp.f32 %v36_v7 }
  0x2d   :  { %v75_v9 = vpop.eup %74 }
  0x2e   :  { %v77_v11 = vpop.eup %76  ;;  %v42_v12 = vmul.f32 %v75_v9, %v41_v8 }
  0x2f   :  { %v43_v13 = vmul.f32 %v77_v11, %v41_v8 }
  0x30   :  { %v45_v14 = vadd.f32 %v44_v10, %v42_v12 }
  0x31   :  { %v46_v15 = vadd.f32 %v44_v10, %v43_v13 }
  0x32   :  { %v47_v16 = vmul.f32 %v45_v14, %v26_v0 }
  0x33   :  { %v48_v17 = vmul.f32 %v46_v15, %v27_v1 }
  0x34   :  { %49 = vst [vmem:[#allocation6] sm:$0xff] %v47_v16 }
  0x35   :  { %50 = vst [vmem:[#allocation6 + $0x8] sm:$0xff] %v48_v17 }
  0x36   :  { %109 = shalt.err (!%p106_p9)
}
  0x37   :  { %60 = dma.vmem_to_hbm [thread:$0]  %s58_s19, 256, %s153_s2, [#allocation5]  }
  0x38   :  { %120 = dma.done.wait [#allocation5], 256  }
  0x39   :  { %121 = vsyncadd [#allocation5], 4294967040 }
  0x3a   :  { %64 = vsyncpa [#allocation4], 1 }
  0x3b   :  { %65 = vsyncpa [#allocation5], 1 }

</bundles_post_ra>
